<compile_context>
chip_gen: v5e
topology: v5e:2x2
jax: 0.10.0
libtpu: 0.0.40
codegen_flags: <defaults>
</compile_context>

<pallas_src>
import functools

import jax
import jax.numpy as jnp
from jax.experimental import pallas as pl
from jax.experimental.pallas import tpu as pltpu


def _cdiv(a, b):
    return -(-a // b)


def _round_up(n, m):
    return _cdiv(n, m) * m


def _make_pool_kernel(hw_true, t_hw, num_k, nkpc, needs_mask):
    """Streaming per-(batch, split) sum/max pooling over the spatial (lane) axis."""

    def kernel(x_ref, out_ref, sum_acc, max_acc):
        # x_ref  : (1, C, t_hw) native dtype — one batch row, one spatial tile.
        # out_ref: (1, 1, C, 2) f32 — [..., 0] = partial sum, [..., 1] = partial max.
        # sum_acc/max_acc: (C, 1) f32 scratch, persistent across the k (reduction) axis.
        k = pl.program_id(2)

        @pl.when(k == 0)
        def _init():
            sum_acc[...] = jnp.zeros_like(sum_acc)
            max_acc[...] = jnp.full_like(max_acc, -jnp.inf)

        def accumulate(x_sum, x_max):
            sum_acc[...] += jnp.sum(x_sum, axis=-1, keepdims=True, dtype=jnp.float32)
            max_acc[...] = jnp.maximum(
                max_acc[...],
                jnp.max(x_max, axis=-1, keepdims=True).astype(jnp.float32))

        if needs_mask:
            # Global spatial-tile index of this (split, step) pair. Tiles at/after the
            # last one may be ragged or entirely past the end of the array; only those
            # pay for the masking work.
            g = pl.program_id(1) * nkpc + k

            @pl.when(g < num_k - 1)
            def _full_tile():
                x = x_ref[0]                          # (C, t_hw)
                accumulate(x, x)

            @pl.when(g >= num_k - 1)
            def _edge_tile():
                x = x_ref[0]                          # (C, t_hw)
                rem = hw_true - g * t_hw              # scalar; <= 0 for overflow tiles
                lane = jax.lax.broadcasted_iota(jnp.int32, x.shape, 1)
                valid = lane < rem
                accumulate(jnp.where(valid, x, jnp.zeros_like(x)),
                           jnp.where(valid, x, jnp.full_like(x, -jnp.inf)))
        else:
            x = x_ref[0]
            accumulate(x, x)

        @pl.when(k == nkpc - 1)
        def _finalize():
            pooled = jnp.concatenate([sum_acc[...], max_acc[...]], axis=-1)  # (C, 2)
            out_ref[...] = pooled.reshape(out_ref.shape)

    return kernel


@functools.partial(jax.jit, static_argnames=("t_hw",))
def channel_attention(x, w1, w2, *, t_hw=None):
    """CBAM channel attention.

    x : (B, C, H, W) NCHW, floating dtype.
    w1: (C//r, C)  first 1x1 conv weight (no bias).
    w2: (C, C//r)  second 1x1 conv weight (no bias).
    Returns the (B, C, 1, 1) sigmoid channel-attention map (dtype of x).
    """
    B, C, H, W = x.shape
    HW = H * W
    itemsize = jnp.dtype(x.dtype).itemsize
    S = 2  # spatial splits: second "parallel" grid axis -> megacore sharding on v7x

    # Spatial tile: a multiple of 128 lanes, up to ~8 MiB per block so the per-grid-step
    # overhead is amortized; double-buffered input stays <= ~16 MiB of VMEM.
    if t_hw is None:
        cap = max(128, ((8 * 1024 * 1024) // max(1, C * itemsize)) // 128 * 128)
        t_hw = min(_round_up(HW, 128), cap)
    else:
        t_hw = max(128, _round_up(int(t_hw), 128))

    num_k = _cdiv(HW, t_hw)           # total spatial tiles (last one may be ragged)
    nkpc = _cdiv(num_k, S)            # tiles per split
    needs_mask = (HW % t_hw != 0) or (num_k % S != 0)

    x_flat = x.reshape(B, C, HW)      # contiguous NCHW reshape: no copy, no padding

    kernel = _make_pool_kernel(HW, t_hw, num_k, nkpc, needs_mask)

    # VMEM budget: double-buffered input block + tiny scratch/output + slack.
    block_bytes = C * t_hw * itemsize
    vmem_limit = int(min(max(2 * block_bytes + 4 * 1024 * 1024, 8 * 1024 * 1024),
                         32 * 1024 * 1024))

    last_blk = num_k - 1
    pooled = pl.pallas_call(
        kernel,
        out_shape=jax.ShapeDtypeStruct((B, S, C, 2), jnp.float32),
        grid_spec=pltpu.PrefetchScalarGridSpec(
            num_scalar_prefetch=0,
            grid=(B, S, nkpc),
            in_specs=[
                # Clamp the block index so ragged-split overflow tiles stay in bounds;
                # their contents are fully masked out inside the kernel.
                pl.BlockSpec(
                    (1, C, t_hw),
                    lambda b, s, k: (b, 0, jnp.minimum(s * nkpc + k, last_blk))),
            ],
            # Constant across the reduction axis -> written back once per (batch, split).
            out_specs=pl.BlockSpec((1, 1, C, 2), lambda b, s, k: (b, s, 0, 0)),
            scratch_shapes=[
                pltpu.VMEM((C, 1), jnp.float32),   # running sum
                pltpu.VMEM((C, 1), jnp.float32),   # running max
            ],
        ),
        compiler_params=pltpu.CompilerParams(
            dimension_semantics=("parallel", "parallel", "arbitrary"),
            vmem_limit_bytes=vmem_limit,
        ),
    )(x_flat)

    # Combine the per-split partials and run the tiny shared MLP + sigmoid in XLA,
    # batched over (avg, max) and B: one (2B, C)x(C, Cr) + one (2B, Cr)x(Cr, C) matmul.
    sums = jnp.sum(pooled[..., 0], axis=1)                          # (B, C) f32
    maxs = jnp.max(pooled[..., 1], axis=1)                          # (B, C) f32
    avg = sums * (1.0 / float(HW))

    both = jnp.concatenate([avg, maxs], axis=0)                     # (2B, C)
    h = jax.nn.relu(jnp.dot(both, jnp.transpose(w1),
                            preferred_element_type=jnp.float32))    # (2B, Cr)
    y = jnp.dot(h, jnp.transpose(w2),
                preferred_element_type=jnp.float32)                 # (2B, C)
    out = jax.nn.sigmoid(y[:B] + y[B:]).astype(x.dtype)             # (B, C)
    return out.reshape(B, C, 1, 1)


def reference(x, w1, w2):
    """Pure-JAX reference mirroring the PyTorch forward."""
    avg = jnp.mean(x, axis=(2, 3))           # (B, C)
    mx = jnp.max(x, axis=(2, 3))             # (B, C)

    def mlp(v):
        return jnp.maximum(v @ w1.T, 0.0) @ w2.T

    return jax.nn.sigmoid(mlp(avg) + mlp(mx))[:, :, None, None]


if __name__ == "__main__":
    # Shapes consistent with the module: channel must be >= reduction (=8).
    B, C, reduction = 2, 32, 8
    Cr = C // reduction

    key = jax.random.PRNGKey(0)
    kx1, kx2, kx3, k1, k2 = jax.random.split(key, 5)

    # Conv2d 1x1 weights (no bias): conv1 (C//r, C), conv2 (C, C//r).
    w1 = jax.random.normal(k1, (Cr, C), dtype=jnp.float32) * (1.0 / jnp.sqrt(C))
    w2 = jax.random.normal(k2, (C, Cr), dtype=jnp.float32) * (1.0 / jnp.sqrt(Cr))

    # Case 1: H*W multiple of the tile, even tile count -> unmasked path + core split.
    x1 = jax.random.normal(kx1, (B, C, 16, 16), dtype=jnp.float32)
    out1 = jax.block_until_ready(channel_attention(x1, w1, w2, t_hw=128))
    ref1 = reference(x1, w1, w2)
    assert out1.shape == (B, C, 1, 1)
    assert jnp.allclose(out1, ref1, atol=1e-5, rtol=1e-5), "mismatch vs reference (case 1)"

    # Case 2: ragged H*W (10x10=100 < one 128-lane tile) -> masked edge tile, no padding.
    x2 = jax.random.normal(kx2, (B, C, 10, 10), dtype=jnp.float32)
    out2 = jax.block_until_ready(channel_attention(x2, w1, w2))
    ref2 = reference(x2, w1, w2)
    assert jnp.allclose(out2, ref2, atol=1e-5, rtol=1e-5), "mismatch vs reference (case 2)"

    # Case 3: odd tile count (16x40=640 -> 5 tiles of 128), B=1 -> exercises the clamped
    # overflow tile on the second split and the cross-split combine.
    x3 = jax.random.normal(kx3, (1, C, 16, 40), dtype=jnp.float32)
    out3 = jax.block_until_ready(channel_attention(x3, w1, w2, t_hw=128))
    ref3 = reference(x3, w1, w2)
    assert jnp.allclose(out3, ref3, atol=1e-5, rtol=1e-5), "mismatch vs reference (case 3)"

    print("KERNEL_OK")
</pallas_src>

<mosaic_0001>
module attributes {stable_mosaic.version = 11 : i64} {
  func.func @kernel(%arg0: i32, %arg1: i32, %arg2: i32, %arg3: memref<1x32x128xf32, #tpu.memory_space<vmem>>, %arg4: memref<1x1x32x2xf32, #tpu.memory_space<vmem>>, %arg5: memref<32x1xf32, #tpu.memory_space<vmem>>, %arg6: memref<32x1xf32, #tpu.memory_space<vmem>>) attributes {dimension_semantics = [#tpu.dimension_semantics<parallel>, #tpu.dimension_semantics<parallel>, #tpu.dimension_semantics<arbitrary>], iteration_bounds = array<i64: 2, 2, 1>, scalar_prefetch = 0 : i64, scratch_operands = 2 : i64, tpu.core_type = #tpu.core_type<tc>, window_params = [{transform_indices = @transform_0, window_bounds = array<i64: 1, 32, 128>}, {transform_indices = @transform_1, window_bounds = array<i64: 1, 1, 32, 2>}]} {
    %c0_i32 = arith.constant 0 : i32
    %0 = arith.cmpi eq, %arg2, %c0_i32 : i32
    %1 = arith.extui %0 : i1 to i32
    %c0_i32_0 = arith.constant 0 : i32
    %2 = arith.cmpi ne, %1, %c0_i32_0 : i32
    scf.if %2 {
      %cst_14 = arith.constant 0.000000e+00 : f32
      %18 = vector.broadcast %cst_14 : f32 to vector<32x1xf32>
      %c0_15 = arith.constant 0 : index
      %c0_16 = arith.constant 0 : index
      %19 = vector.load %arg5[%c0_15, %c0_16] : memref<32x1xf32, #tpu.memory_space<vmem>>, vector<32x1xf32>
      tpu.vector_store %arg5[%c0_15, %c0_16], %18 {strides = array<i32>} : memref<32x1xf32, #tpu.memory_space<vmem>>, vector<32x1xf32>,
      %cst_17 = arith.constant 0xFF800000 : f32
      %20 = vector.broadcast %cst_17 : f32 to vector<32x1xf32>
      %c0_18 = arith.constant 0 : index
      %c0_19 = arith.constant 0 : index
      %21 = vector.load %arg6[%c0_18, %c0_19] : memref<32x1xf32, #tpu.memory_space<vmem>>, vector<32x1xf32>
      tpu.vector_store %arg6[%c0_18, %c0_19], %20 {strides = array<i32>} : memref<32x1xf32, #tpu.memory_space<vmem>>, vector<32x1xf32>,
    } else {
    }
    %c0 = arith.constant 0 : index
    %c0_1 = arith.constant 0 : index
    %c0_2 = arith.constant 0 : index
    %3 = vector.load %arg3[%c0, %c0_1, %c0_2] : memref<1x32x128xf32, #tpu.memory_space<vmem>>, vector<1x32x128xf32>
    %4 = vector.shape_cast %3 : vector<1x32x128xf32> to vector<32x128xf32>
    %c0_3 = arith.constant 0 : index
    %c0_4 = arith.constant 0 : index
    %5 = vector.load %arg5[%c0_3, %c0_4] : memref<32x1xf32, #tpu.memory_space<vmem>>, vector<32x1xf32>
    %cst = arith.constant dense<0.000000e+00> : vector<32xf32>
    %6 = vector.multi_reduction <add>, %4, %cst [1] : vector<32x128xf32> to vector<32xf32>
    %7 = vector.shape_cast %6 : vector<32xf32> to vector<32x1xf32>
    %8 = arith.addf %5, %7 : vector<32x1xf32>
    %c0_5 = arith.constant 0 : index
    %c0_6 = arith.constant 0 : index
    %9 = vector.load %arg5[%c0_5, %c0_6] : memref<32x1xf32, #tpu.memory_space<vmem>>, vector<32x1xf32>
    tpu.vector_store %arg5[%c0_5, %c0_6], %8 {strides = array<i32>} : memref<32x1xf32, #tpu.memory_space<vmem>>, vector<32x1xf32>,
    %c0_7 = arith.constant 0 : index
    %c0_8 = arith.constant 0 : index
    %10 = vector.load %arg6[%c0_7, %c0_8] : memref<32x1xf32, #tpu.memory_space<vmem>>, vector<32x1xf32>
    %cst_9 = arith.constant dense<0xFF800000> : vector<32xf32>
    %11 = vector.multi_reduction <maximumf>, %4, %cst_9 [1] : vector<32x128xf32> to vector<32xf32>
    %12 = vector.shape_cast %11 : vector<32xf32> to vector<32x1xf32>
    %13 = arith.maximumf %10, %12 : vector<32x1xf32>
    %c0_10 = arith.constant 0 : index
    %c0_11 = arith.constant 0 : index
    %14 = vector.load %arg6[%c0_10, %c0_11] : memref<32x1xf32, #tpu.memory_space<vmem>>, vector<32x1xf32>
    tpu.vector_store %arg6[%c0_10, %c0_11], %13 {strides = array<i32>} : memref<32x1xf32, #tpu.memory_space<vmem>>, vector<32x1xf32>,
    %c0_i32_12 = arith.constant 0 : i32
    %15 = arith.cmpi eq, %arg2, %c0_i32_12 : i32
    %16 = arith.extui %15 : i1 to i32
    %c0_i32_13 = arith.constant 0 : i32
    %17 = arith.cmpi ne, %16, %c0_i32_13 : i32
    scf.if %17 {
      %c0_14 = arith.constant 0 : index
      %c0_15 = arith.constant 0 : index
      %18 = vector.load %arg5[%c0_14, %c0_15] : memref<32x1xf32, #tpu.memory_space<vmem>>, vector<32x1xf32>
      %c0_16 = arith.constant 0 : index
      %c0_17 = arith.constant 0 : index
      %19 = vector.load %arg6[%c0_16, %c0_17] : memref<32x1xf32, #tpu.memory_space<vmem>>, vector<32x1xf32>
      %20 = tpu.concatenate %18, %19 in 1 : vector<32x1xf32>, vector<32x1xf32> -> vector<32x2xf32>
      %21 = vector.shape_cast %20 : vector<32x2xf32> to vector<1x1x32x2xf32>
      %c0_18 = arith.constant 0 : index
      %c0_19 = arith.constant 0 : index
      %c0_20 = arith.constant 0 : index
      %c0_21 = arith.constant 0 : index
      %22 = vector.load %arg4[%c0_18, %c0_19, %c0_20, %c0_21] : memref<1x1x32x2xf32, #tpu.memory_space<vmem>>, vector<1x1x32x2xf32>
      tpu.vector_store %arg4[%c0_18, %c0_19, %c0_20, %c0_21], %21 {strides = array<i32>} : memref<1x1x32x2xf32, #tpu.memory_space<vmem>>, vector<1x1x32x2xf32>,
    } else {
    }
    return
  }
  func.func @transform_0(%arg0: i32, %arg1: i32, %arg2: i32) -> (i32, i32, i32) {
    %c1_i32 = arith.constant 1 : i32
    %0 = arith.muli %arg1, %c1_i32 : i32
    %1 = arith.addi %0, %arg2 : i32
    %c1_i32_0 = arith.constant 1 : i32
    %2 = arith.minsi %1, %c1_i32_0 : i32
    %c0_i32 = arith.constant 0 : i32
    %c0_i32_1 = arith.constant 0 : i32
    return %arg0, %c0_i32, %2 : i32, i32, i32
  }
  func.func @transform_1(%arg0: i32, %arg1: i32, %arg2: i32) -> (i32, i32, i32, i32) {
    %c0_i32 = arith.constant 0 : i32
    %c0_i32_0 = arith.constant 0 : i32
    %c0_i32_1 = arith.constant 0 : i32
    return %arg0, %arg1, %c0_i32, %c0_i32_0 : i32, i32, i32, i32
  }
}

</mosaic_0001>

<bundles_post_ra>
// kernel: channel_attention.1
= control target key start
LH: loop header
LB: loop body
LE: loop exit
PB: predicated region body
PF: predicated region fallthrough
CT: control target
= control target key end

     0   :  { %s542_s6 = smov 0   ;;  %s544_s7 = smov 0   ;;  %s654_s0 = inlined_call_operand.vmem [shape: f32[2,32,256], index: 0, kind: input, shape index: {}]   ;;  %s655_s1 = inlined_call_operand.vmem [shape: f32[2,2,32,2], index: 1, kind: output, shape index: {}]  }
   0x1   :  { %s546_s8 = smov 0   ;;  %s548_s9 = smov 0  }
   0x2   :  { %s550_s10 = smov 0   ;;  %s552_s11 = smov 0  }
   0x3   :  { %s554_s12 = smov 0  }
   0x4 LB: > { %s26_s13 = sadd.s32 1, %s519_s10  ;;  %s30_s14 = sadd.s32 1, %s523_s11  ;;  %s527_s12 = sphi %s554_s12, %s11_s12   ;;  %s523_s11 = sphi %s552_s11, %s661_s11   ;;  %s519_s10 = sphi %s550_s10, %s660_s10   ;;  %s515_s9 = sphi %s548_s9, %s659_s9   ;;  %s511_s8 = sphi %s546_s8, %s658_s8   ;;  %s507_s7 = sphi %s544_s7, %s657_s7   ;;  %s503_s6 = sphi %s542_s6, %s656_s6  }
   0x5   : > { %p28_p0 = scmp.ge.s32.totalorder %s26_s13, 2  ;;  %p35_p1 = scmp.lt.s32.totalorder %s519_s10, 1 }
   0x6   : > { %p52_p2 = scmp.ne.s32.totalorder %s507_s7, %s503_s6  ;;  %p53_p5 = scmp.eq.s32.totalorder %s527_s12, 0 }
   0x7   : > { %s663_s13 = smov (%p28_p0, %s26_s13), 0  ;;  %s665_s14 = smov (!%p28_p0, %s30_s14), %s523_s11 }
   0x8   : > { %s36_s15 = scalar_select %p35_p1, %s519_s10, 1 }
   0x9   : > { %p32_p3 = scmp.ge.s32.totalorder %s665_s14, 2  ;;  %p38_p4 = scmp.lt.s32.totalorder %s663_s13, 1 }
   0xa   : > { %p54_p6 = por %p53_p5, %p52_p2  ;;  %s45_s20 = sadd.s32 1, %s507_s7 }
   0xb   : > { %s667_s14 = smov (%p32_p3, %s665_s14), 0  ;;  %p403_p8 = scmp.ge.s32.totalorder %s527_s12, 4 }
   0xc   : > { %s39_s16 = scalar_select %p38_p4, %s663_s13, 1 }
   0xd   : > { %s40_s17 = ssub.s32 %s523_s11, %s667_s14 }
   0xe   : > { %s41_s18 = ssub.s32 %s36_s15, %s39_s16  ;;  %106 = sbr.rel (%p403_p8) target bundleno = 29 (0x1d), region = 16 }
   0xf   : > { %s42_s19 = sor.u32 %s41_s18, %s40_s17 }
  0x10   : > { %p43_p7 = scmp.eq.s32.totalorder %s42_s19, 0 }
  0x12   : > { %s595_s21 = scalar_select %p43_p7, %s507_s7, %s45_s20  }
  0x13   : > { %109 = sbr.rel (!%p54_p6) target bundleno = 29 (0x1d), region = 20  ;;  %s111_s22 = sand.u32 (%p54_p6), 1, %s507_s7  }
  0x14   : > { %s405_s23 = sshll.u32 (%p54_p6), %s523_s11, 3  ;;  %s404_s24 = sshll.u32 (%p54_p6), %s111_s22, 5 }
  0x15   : > { %s118_s25 = sadd.s32 (%p54_p6), %s405_s23, %s36_s15  ;;  %s113_s30 = scalar_lea.vmem (%p54_p6), [#allocation4], %s404_s24 }
  0x16   : > { %s406_s26 = sshll.u32 (%p54_p6), %s118_s25, 3 }
  0x17   : > { %s120_s29 = scalar_lea.vmem (%p54_p6), %s654_s0, %s406_s26 }
  0x18   : > { %v155_v0 = vld [vmem:[%s120_s29] sm:$0xff]  ;;  %v157_v1 = vld [vmem:[%s120_s29 + $0x10] sm:$0xff] }
  0x19   : > { %v159_v2 = vld [vmem:[%s120_s29 + $0x20] sm:$0xff]  ;;  %156 = vst [vmem:[%s113_s30] sm:$0xff] %v155_v0  ;;  %v161_v3 = vld [vmem:[%s120_s29 + $0x30] sm:$0xff] }
  0x1a   : > { %158 = vst [vmem:[%s113_s30 + $0x8] sm:$0xff] %v157_v1 }
  0x1b   : > { %160 = vst [vmem:[%s113_s30 + $0x10] sm:$0xff] %v159_v2 }
  0x1c   : > { %162 = vst [vmem:[%s113_s30 + $0x18] sm:$0xff] %v161_v3 }
  0x1d PF: > { %p407_p9 = scmp.ge.s32.totalorder %s527_s12, 1  ;;  %p167_p10 = scmp.lt.s32.totalorder %s527_s12, 5 }
  0x1f   : > { %p168_p11 = pnand %p407_p9, %p167_p10 }
  0x20   : > { %s174_s2 = sand.u32 (!%p168_p11), 1, %s503_s6   ;;  %s531_s5 = smov (!%p168_p11), 1  }
  0x21   : > { %171 = sbr.rel (%p168_p11) target bundleno = 290 (0x122), region = 58  ;;  %s408_s3 = sshll.u32 (!%p168_p11), %s174_s2, 5 }
  0x22   : > { %s176_s4 = scalar_lea.vmem (!%p168_p11), [#allocation4], %s408_s3  ;;  %p200_p12 = scmp.lt.s32.totalorder (!%p168_p11), %s515_s9, 1 }
  0x23   : > { %p202_p13 = scmp.lt.s32.totalorder (!%p168_p11), %s511_s8, 1 }
  0x26   : > { %vm213_vm0 = vcmask 7168   ;;  %v529_v4 = vmov -inf   ;;  %v224_v5 = vld [vmem:[%s176_s4 + $0x10] sm:$0xff]  ;;  %v222_v6 = vld [vmem:[%s176_s4] sm:$0xff]  ;;  %v223_v7 = vld [vmem:[%s176_s4 + $0x8] sm:$0xff]  ;;  %v530_v9 = vmov 0.0  }
  0x27   : > { %220 = vst.msk [vmem:[#allocation3 + $0x10] sm:$0xff] %vm213_vm0, %v529_v4  ;;  %255 = vmax.xlane.f32.xlu1 %v224_v5  ;;  %251 = vmax.xlane.f32.xlu0 %v222_v6  ;;  %v225_v8 = vld [vmem:[%s176_s4 + $0x18] sm:$0xff]  ;;  %s669_s9 = smov (!%p200_p12, %s515_s9), 1  ;;  %s671_s8 = smov (!%p202_p13, %s511_s8), 1  ;;  %vm298_vm1 = vcmask 15360  }
  0x28   : > { %218 = vst.msk [vmem:[#allocation3] sm:$0xff] %vm213_vm0, %v529_v4  ;;  %230 = vadd.xlane.f32.xlu2 %v222_v6  ;;  %s409_s6 = sshll.u32 %s671_s8, 2  ;;  %s410_s15 = sshll.u32 %s669_s9, 3 }
  0x29   : > { %219 = vst.msk [vmem:[#allocation3 + $0x8] sm:$0xff] %vm213_vm0, %v529_v4  ;;  %s206_s16 = sadd.s32 %s410_s15, %s409_s6 }
  0x2a   : > { %221 = vst.msk [vmem:[#allocation3 + $0x18] sm:$0xff] %vm213_vm0, %v529_v4  ;;  %s411_s17 = sshll.u32 %s206_s16, 3 }
  0x2b   : > { %214 = vst.msk [vmem:[#allocation2] sm:$0xff] %vm213_vm0, %v530_v9  ;;  %s208_s20 = scalar_lea.vmem %s655_s1, %s411_s17 }
  0x2c   : > { %215 = vst.msk [vmem:[#allocation2 + $0x8] sm:$0xff] %vm213_vm0, %v530_v9 }
  0x2d   : > { %216 = vst.msk [vmem:[#allocation2 + $0x10] sm:$0xff] %vm213_vm0, %v530_v9 }
  0x2e   : > { %217 = vst.msk [vmem:[#allocation2 + $0x18] sm:$0xff] %vm213_vm0, %v530_v9  ;;  %v249_v10 = vld [vmem:[#allocation3 + $0x10] sm:$0xff] }
  0x2f   : > { %253 = vmax.xlane.f32.xlu0 %v223_v7  ;;  %257 = vmax.xlane.f32.xlu1 %v225_v8  ;;  %v247_v11 = vld [vmem:[#allocation3] sm:$0xff] }
  0x30   : > { %232 = vadd.xlane.f32.xlu2 %v223_v7  ;;  %v248_v19 = vld [vmem:[#allocation3 + $0x8] sm:$0xff] }
  0x31   : > { %v250_v20 = vld [vmem:[#allocation3 + $0x18] sm:$0xff] }
  0x32   : > { %v226_v12 = vld [vmem:[#allocation2] sm:$0xff] }
  0x33   : > { %v227_v21 = vld [vmem:[#allocation2 + $0x8] sm:$0xff] }
  0x34   : > { %v228_v34 = vld [vmem:[#allocation2 + $0x10] sm:$0xff] }
  0x35   : > { %v229_v32 = vld [vmem:[#allocation2 + $0x18] sm:$0xff] }
  0x37   : > { %236 = vadd.xlane.f32.xlu1 %v225_v8  ;;  %234 = vadd.xlane.f32.xlu0 %v224_v5 }
  0x9a   : > { %v256_v13 = vpop.xlane.xlu1 %255  ;;  %v252_v14 = vpop.xlane.xlu0 %251 }
  0x9b   : > { %v261_v15 = vmax.f32 %v249_v10, %v256_v13  ;;  %v259_v16 = vmax.f32 %v247_v11, %v252_v14  ;;  %v231_v17 = vpop.xlane.xlu2 %230 }
  0x9c   : > { %v238_v18 = vadd.f32 %v231_v17, %v226_v12 }
  0x9d   : > { %265 = vst.msk [vmem:[#allocation3 + $0x10] sm:$0xff] %vm213_vm0, %v261_v15 }
  0x9e   : > { %263 = vst.msk [vmem:[#allocation3] sm:$0xff] %vm213_vm0, %v259_v16 }
  0x9f   : > { %243 = vst.msk [vmem:[#allocation2] sm:$0xff] %vm213_vm0, %v238_v18 }
  0xa2   : > { %v254_v22 = vpop.xlane.xlu0 %253  ;;  %v258_v23 = vpop.xlane.xlu1 %257 }
  0xa3   : > { %v260_v24 = vmax.f32 %v248_v19, %v254_v22  ;;  %v262_v25 = vmax.f32 %v250_v20, %v258_v23  ;;  %v233_v26 = vpop.xlane.xlu2 %232 }
  0xa4   : > { %v276_v27 = vld [vmem:[#allocation3 + $0x10] sm:$0xff]  ;;  %v239_v28 = vadd.f32 %v233_v26, %v227_v21 }
  0xa5   : > { %264 = vst.msk [vmem:[#allocation3 + $0x8] sm:$0xff] %vm213_vm0, %v260_v24  ;;  %286 = vrot.lane.b32.xlu1 %v276_v27, %s531_s5  ;;  %v274_v29 = vld [vmem:[#allocation3] sm:$0xff] }
  0xa6   : > { %282 = vrot.lane.b32.xlu2 %v274_v29, %s531_s5  ;;  %266 = vst.msk [vmem:[#allocation3 + $0x18] sm:$0xff] %vm213_vm0, %v262_v25  ;;  %v270_v38 = vld [vmem:[#allocation2] sm:$0xff] }
  0xa7   : > { %244 = vst.msk [vmem:[#allocation2 + $0x8] sm:$0xff] %vm213_vm0, %v239_v28 }
  0xaa   : > { %v237_v33 = vpop.xlane.xlu1 %236  ;;  %v235_v35 = vpop.xlane.xlu0 %234 }
  0xab   : > { %v241_v36 = vadd.f32 %v237_v33, %v229_v32  ;;  %v240_v37 = vadd.f32 %v235_v35, %v228_v34 }
  0xac   : > { %v275_v30 = vld [vmem:[#allocation3 + $0x8] sm:$0xff] }
  0xad   : > { %284 = vrot.lane.b32.xlu0 %v275_v30, %s531_s5  ;;  %v277_v31 = vld [vmem:[#allocation3 + $0x18] sm:$0xff]  ;;  %246 = vst.msk [vmem:[#allocation2 + $0x18] sm:$0xff] %vm213_vm0, %v241_v36 }
  0xae   : > { %288 = vrot.lane.b32.xlu2 %v277_v31, %s531_s5  ;;  %245 = vst.msk [vmem:[#allocation2 + $0x10] sm:$0xff] %vm213_vm0, %v240_v37  ;;  %v271_v47 = vld [vmem:[#allocation2 + $0x8] sm:$0xff] }
  0xb4   : > { %v273_v41 = vld [vmem:[#allocation2 + $0x18] sm:$0xff] }
  0xb5   : > { %v272_v44 = vld [vmem:[#allocation2 + $0x10] sm:$0xff] }
 0x100   : > { %v283_v39 = vpop.permute.xlu2 %282 }
 0x101   : > { %v294_v40 = vsel %vm213_vm0, %v270_v38, %v283_v39 }
 0x102   : > { %299 = vst.msk [vmem:[%s208_s20] sm:$0xff] %vm298_vm1, %v294_v40 }
 0x108   : > { %v289_v42 = vpop.permute.xlu2 %288 }
 0x109   : > { %v297_v43 = vsel %vm213_vm0, %v273_v41, %v289_v42 }
 0x10a   : > { %302 = vst.msk [vmem:[%s208_s20 + $0x18] sm:$0xff] %vm298_vm1, %v297_v43 }
 0x117   : > { %v287_v45 = vpop.permute.xlu1 %286 }
 0x118   : > { %v296_v46 = vsel %vm213_vm0, %v272_v44, %v287_v45 }
 0x119   : > { %301 = vst.msk [vmem:[%s208_s20 + $0x10] sm:$0xff] %vm298_vm1, %v296_v46 }
 0x11f   : > { %v285_v48 = vpop.permute.xlu0 %284 }
 0x120   : > { %v295_v49 = vsel %vm213_vm0, %v271_v47, %v285_v48 }
 0x121   : > { %300 = vst.msk [vmem:[%s208_s20 + $0x8] sm:$0xff] %vm298_vm1, %v295_v49 }
 0x122 PF: > { %s11_s12 = sadd.s32 1, %s527_s12   ;;  %s656_s6 = smov %s507_s7 }
 0x123   : > { %p8_p0 = scmp.ge.s32.totalorder %s11_s12, 6   ;;  %s657_s7 = smov %s595_s21 }
 0x124   : > { %s658_s8 = smov %s519_s10  ;;  %s659_s9 = smov %s523_s11 }
 0x125   : > { %s660_s10 = smov %s663_s13  ;;  %s661_s11 = smov %s667_s14 }
 0x126   :  { %10 = sbr.rel (!%p8_p0) target bundleno = 4 (0x4), region = 105 }

</bundles_post_ra>
